<compile_context>
chip_gen: v7x
topology: tpu7x:2x2x1
jax: 0.10.0
libtpu: 0.0.40
codegen_flags: <defaults>
</compile_context>

<pallas_src>
import math
from collections import OrderedDict

import jax
import jax.numpy as jnp
import numpy as np
from jax.experimental import pallas as pl
from jax.experimental.pallas import tpu as pltpu


class NestedTensor:
    def __init__(self, tensors, mask):
        self.tensors = tensors
        self.mask = mask


# --------------------- host-side weight preprocessing (once) -------------------------
def _build_stage_mats(w, b, H, W):
    """Fold the 3x3 / stride-2 / pad-1 conv weights into one dense matmul weight.

    Returns:
      Vstack : (3*W*Cin, Wo*Cout) bf16 -- row-tap-major unfolded weight (width taps +
               channel mixing + left/right zero padding baked in)
      brow   : (1, Wo*Cout) f32        -- bias tiled over output width
    """
    w = np.asarray(w, np.float32)            # (3, 3, Cin, Cout) HWIO
    b = np.asarray(b, np.float32)
    Cin, Cout = w.shape[2], w.shape[3]
    Wo = W // 2
    K = W * Cin
    N = Wo * Cout

    V = np.zeros((3 * K, N), np.float32)
    for di in range(3):                      # row tap
        for j in range(Wo):                  # output column
            for dj in range(3):              # column tap
                s = 2 * j + dj - 1           # unpadded input column feeding output column j
                if 0 <= s < W:
                    V[di * K + s * Cin: di * K + (s + 1) * Cin,
                      j * Cout:(j + 1) * Cout] = w[di, dj]

    brow = np.tile(b, Wo)[None, :].astype(np.float32)
    # bf16 MXU inputs (single-pass matmul, half the resident-weight bytes); f32 accumulation
    # is preserved via preferred_element_type inside the kernel.
    return jnp.asarray(V, jnp.bfloat16), jnp.asarray(brow, jnp.float32)


# ------------------------------- Pallas kernel ---------------------------------------
def backbone_forward_pallas(x_nhwc, stage_mats, out_dims):
    """Run all stages in one pallas_call (grid=(1,)). Returns list of NHWC feature maps."""
    B, H, W, Cin = x_nhwc.shape
    x2d = x_nhwc.reshape(B * H, W * Cin)     # batch folded into rows, channels minor

    n_stage = len(stage_mats)
    ho_list = [d[0] for d in out_dims]

    def kernel(x_ref, *refs):
        v_refs = refs[0:n_stage]
        b_refs = refs[n_stage:2 * n_stage]
        o_refs = refs[2 * n_stage:]

        src = x_ref                                   # (B*Hin, W*Cin) VMEM ref
        for s in range(n_stage):
            o_ref = o_refs[s]
            M = o_ref.shape[0]                        # B * Ho (batch folded into M)
            Ho = ho_list[s]
            lanes = src.shape[-1]                     # W*Cin of this stage (=128 here)

            # Three stride-2 row taps of the previous stage (sublane-strided ref reads).
            tap1 = src[pl.ds(0, M, stride=2), :]      # input row 2i   (tap di=1)
            tap2 = src[pl.ds(1, M, stride=2), :]      # input row 2i+1 (tap di=2)
            # tap di=0 needs input row 2i-1 == tap2 shifted down one output row;
            # zero-mask each image's first output row (the top pad row, i == 0).
            rolled = pltpu.roll(tap2, shift=1, axis=0)
            row = jax.lax.broadcasted_iota(jnp.int32, (M, lanes), 0)
            tap0 = jnp.where((row % Ho) == 0, 0.0, rolled)

            xcat = jnp.concatenate([tap0, tap1, tap2], axis=-1).astype(jnp.bfloat16)
            acc = jnp.dot(xcat, v_refs[s][...],
                          preferred_element_type=jnp.float32)        # (M, Wo*Cout) f32
            y = jnp.maximum(acc + b_refs[s][...], 0.0)
            o_ref[...] = y.astype(o_ref.dtype)
            src = o_ref                               # next stage reads this VMEM ref

    flat_params = [V for (V, _) in stage_mats] + [brow for (_, brow) in stage_mats]

    # grid=(1,): one step, so weights are DMA'd once and default double-buffering /
    # dimension_semantics sharding are non-issues.
    in_specs = [pl.BlockSpec(x2d.shape, lambda i: (0, 0))]
    for V, _ in stage_mats:
        in_specs.append(pl.BlockSpec(V.shape, lambda i: (0, 0)))
    for _, brow in stage_mats:
        in_specs.append(pl.BlockSpec(brow.shape, lambda i: (0, 0)))

    out_shape = tuple(jax.ShapeDtypeStruct((B * ho, wo * co), jnp.float32)
                      for (ho, wo, co) in out_dims)
    out_specs = tuple(pl.BlockSpec((B * ho, wo * co), lambda i: (0, 0))
                      for (ho, wo, co) in out_dims)

    # Advisory cost estimate so XLA schedules the custom call sensibly.
    flops = 0
    bytes_accessed = int(x2d.size) * 4
    for (V, brow), (ho, wo, co) in zip(stage_mats, out_dims):
        flops += 2 * (B * ho) * int(V.shape[0]) * int(V.shape[1])
        bytes_accessed += int(V.size) * 2 + int(brow.size) * 4 + (B * ho) * (wo * co) * 4

    outs = pl.pallas_call(
        kernel,
        out_shape=out_shape,
        grid=(1,),
        in_specs=in_specs,
        out_specs=out_specs,
        compiler_params=pltpu.CompilerParams(dimension_semantics=("arbitrary",)),
        cost_estimate=pl.CostEstimate(flops=int(flops), transcendentals=0,
                                      bytes_accessed=int(bytes_accessed)),
    )(x2d, *flat_params)

    return [o.reshape(B, ho, wo, co) for o, (ho, wo, co) in zip(outs, out_dims)]


# --------------------------------- JAX glue -------------------------------------------
def _nearest_resize_mask(mask, ho, wo):
    # glue: F.interpolate(mask[None].float(), size=(ho, wo)).bool()[0]
    # PyTorch 'nearest' uses src = floor(dst * in / out); pure index gather.
    B, H, W = mask.shape
    ri = (jnp.arange(ho) * H) // ho
    ci = (jnp.arange(wo) * W) // wo
    return mask[:, ri][:, :, ci]


def init_backbone_params(key, cin, channels):
    params = []
    c_prev = cin
    for i, c in enumerate(channels):
        kw, kb = jax.random.split(jax.random.fold_in(key, i))
        fan_in = 9 * c_prev
        w = jax.random.normal(kw, (3, 3, c_prev, c), jnp.float32) / math.sqrt(fan_in)
        b = 0.1 * jax.random.normal(kb, (c,), jnp.float32)
        params.append((w, b))
        c_prev = c
    return params


def backbone_base_forward(tensor_list: NestedTensor, params, return_interm_layers=True):
    """Mirror of BackboneBase.forward: xs = body(x); per-layer NestedTensor(x, resized mask)."""
    x = tensor_list.tensors                              # (B, H, W, Cin) NHWC
    B, H, W, _ = x.shape

    # Weight preprocessing (derived once from the conv parameters + input resolution).
    stage_mats, out_dims = [], []
    h, w_sp = H, W
    for (wgt, bias) in params:
        stage_mats.append(_build_stage_mats(wgt, bias, h, w_sp))
        h, w_sp = h // 2, w_sp // 2
        out_dims.append((h, w_sp, wgt.shape[-1]))

    feats_list = backbone_forward_pallas(x, stage_mats, out_dims)
    feats = OrderedDict((f"layer{i + 1}", f) for i, f in enumerate(feats_list))

    if return_interm_layers:
        return_layers = {"layer1": "0", "layer2": "1", "layer3": "2", "layer4": "3"}
    else:
        return_layers = {"layer4": 0}   # kept as in the original module (integer key)

    out = OrderedDict()
    for lname, key in return_layers.items():
        f = feats[lname]
        m = _nearest_resize_mask(tensor_list.mask, f.shape[1], f.shape[2])
        out[key] = NestedTensor(f, m)
    return out


def _reference_stages(x, params):
    # pure-JAX per-stage reference for the synthetic backbone body (sanity check)
    outs = []
    for (w, b) in params:
        x = jax.lax.conv_general_dilated(
            x, w, window_strides=(2, 2), padding=((1, 1), (1, 1)),
            dimension_numbers=("NHWC", "HWIO", "NHWC"),
            precision=jax.lax.Precision.HIGHEST)
        x = jnp.maximum(x + b, 0.0)
        outs.append(x)
    return outs


if __name__ == "__main__":
    B, H, W, Cin = 2, 32, 32, 4
    channels = (8, 16, 32, 64)          # num_channels = 64

    key = jax.random.PRNGKey(0)
    kx, kp = jax.random.split(key)

    x = jax.random.normal(kx, (B, H, W, Cin), jnp.float32)

    # mask: True marks padded pixels (different per batch element)
    rows = jnp.arange(H)[None, :, None]
    cols = jnp.arange(W)[None, None, :]
    valid_h = jnp.array([28, 20])[:, None, None]
    valid_w = jnp.array([32, 24])[:, None, None]
    mask = (rows >= valid_h) | (cols >= valid_w)          # (B, H, W) bool

    params = init_backbone_params(kp, Cin, channels)
    out = backbone_base_forward(NestedTensor(x, mask), params, return_interm_layers=True)

    for k, nt in out.items():
        jax.block_until_ready(nt.tensors)
        jax.block_until_ready(nt.mask)

    # correctness vs pure-JAX f32 conv reference for every returned layer
    # (bf16 MXU inputs with f32 accumulation -> slightly looser tolerance than pure f32)
    refs = _reference_stages(x, params)
    for i in range(4):
        np.testing.assert_allclose(np.asarray(out[str(i)].tensors), np.asarray(refs[i]),
                                   rtol=5e-2, atol=3e-2)

    assert out["0"].tensors.shape == (B, 16, 16, 8)
    assert out["1"].tensors.shape == (B, 8, 8, 16)
    assert out["2"].tensors.shape == (B, 4, 4, 32)
    assert out["3"].tensors.shape == (B, 2, 2, 64)
    assert out["0"].mask.shape == (B, 16, 16)
    assert out["3"].mask.shape == (B, 2, 2)
    assert out["3"].mask.dtype == jnp.bool_

    print("KERNEL_OK")
</pallas_src>

<mosaic_0001>
module attributes {stable_mosaic.version = 11 : i64} {
  func.func @kernel(%arg0: i32, %arg1: memref<64x128xf32, #tpu.memory_space<vmem>>, %arg2: memref<384x128xbf16, #tpu.memory_space<vmem>>, %arg3: memref<384x128xbf16, #tpu.memory_space<vmem>>, %arg4: memref<384x128xbf16, #tpu.memory_space<vmem>>, %arg5: memref<384x128xbf16, #tpu.memory_space<vmem>>, %arg6: memref<1x128xf32, #tpu.memory_space<vmem>>, %arg7: memref<1x128xf32, #tpu.memory_space<vmem>>, %arg8: memref<1x128xf32, #tpu.memory_space<vmem>>, %arg9: memref<1x128xf32, #tpu.memory_space<vmem>>, %arg10: memref<32x128xf32, #tpu.memory_space<vmem>>, %arg11: memref<16x128xf32, #tpu.memory_space<vmem>>, %arg12: memref<8x128xf32, #tpu.memory_space<vmem>>, %arg13: memref<4x128xf32, #tpu.memory_space<vmem>>) attributes {dimension_semantics = [#tpu.dimension_semantics<arbitrary>], iteration_bounds = array<i64: 1>, scalar_prefetch = 0 : i64, scratch_operands = 0 : i64, tpu.core_type = #tpu.core_type<tc>, window_params = [{pipeline_mode = #tpu.pipeline_mode<synchronous>, transform_indices = @transform_0, window_bounds = array<i64: 64, 128>}, {pipeline_mode = #tpu.pipeline_mode<synchronous>, transform_indices = @transform_1, window_bounds = array<i64: 384, 128>}, {pipeline_mode = #tpu.pipeline_mode<synchronous>, transform_indices = @transform_2, window_bounds = array<i64: 384, 128>}, {pipeline_mode = #tpu.pipeline_mode<synchronous>, transform_indices = @transform_3, window_bounds = array<i64: 384, 128>}, {pipeline_mode = #tpu.pipeline_mode<synchronous>, transform_indices = @transform_4, window_bounds = array<i64: 384, 128>}, {pipeline_mode = #tpu.pipeline_mode<synchronous>, transform_indices = @transform_5, window_bounds = array<i64: 1, 128>}, {pipeline_mode = #tpu.pipeline_mode<synchronous>, transform_indices = @transform_6, window_bounds = array<i64: 1, 128>}, {pipeline_mode = #tpu.pipeline_mode<synchronous>, transform_indices = @transform_7, window_bounds = array<i64: 1, 128>}, {pipeline_mode = #tpu.pipeline_mode<synchronous>, transform_indices = @transform_8, window_bounds = array<i64: 1, 128>}, {pipeline_mode = #tpu.pipeline_mode<synchronous>, transform_indices = @transform_9, window_bounds = array<i64: 32, 128>}, {pipeline_mode = #tpu.pipeline_mode<synchronous>, transform_indices = @transform_10, window_bounds = array<i64: 16, 128>}, {pipeline_mode = #tpu.pipeline_mode<synchronous>, transform_indices = @transform_11, window_bounds = array<i64: 8, 128>}, {pipeline_mode = #tpu.pipeline_mode<synchronous>, transform_indices = @transform_12, window_bounds = array<i64: 4, 128>}]} {
    %c0 = arith.constant 0 : index
    %c0_0 = arith.constant 0 : index
    %0 = tpu.strided_load %arg1[%c0, %c0_0] {strides = array<i32: 2, 1>} : memref<64x128xf32, #tpu.memory_space<vmem>>, vector<32x128xf32>
    %c1 = arith.constant 1 : index
    %c0_1 = arith.constant 0 : index
    %1 = tpu.strided_load %arg1[%c1, %c0_1] {strides = array<i32: 2, 1>} : memref<64x128xf32, #tpu.memory_space<vmem>>, vector<32x128xf32>
    %c1_i32 = arith.constant 1 : i32
    %2 = tpu.dynamic_rotate %1 by %c1_i32 dim 0 : vector<32x128xf32>, i32 -> vector<32x128xf32>
    %3 = tpu.iota {dimensions = array<i32: 0>} : vector<32x128xi32>
    %c16_i32 = arith.constant 16 : i32
    %c0_i32 = arith.constant 0 : i32
    %4 = arith.cmpi eq, %c16_i32, %c0_i32 : i32
    %c1_i32_2 = arith.constant 1 : i32
    %5 = arith.select %4, %c1_i32_2, %c16_i32 : i32
    %6 = vector.broadcast %5 : i32 to vector<32x128xi32>
    %7 = arith.remsi %3, %6 : vector<32x128xi32>
    %c0_i32_3 = arith.constant 0 : i32
    %8 = vector.broadcast %c0_i32_3 : i32 to vector<32x128xi32>
    %9 = arith.cmpi ne, %7, %8 : vector<32x128xi32>
    %c0_i32_4 = arith.constant 0 : i32
    %10 = vector.broadcast %c0_i32_4 : i32 to vector<32x128xi32>
    %11 = arith.cmpi slt, %7, %10 : vector<32x128xi32>
    %c0_i32_5 = arith.constant 0 : i32
    %12 = arith.cmpi slt, %5, %c0_i32_5 : i32
    %13 = vector.broadcast %12 : i1 to vector<32x128xi1>
    %14 = vector.broadcast %13 : vector<32x128xi1> to vector<32x128xi1>
    %15 = arith.xori %11, %14 : vector<32x128xi1>
    %16 = arith.andi %15, %9 : vector<32x128xi1>
    %17 = vector.broadcast %5 : i32 to vector<32x128xi32>
    %18 = arith.addi %7, %17 : vector<32x128xi32>
    %19 = arith.select %16, %18, %7 : vector<32x128xi1>, vector<32x128xi32>
    %c0_i32_6 = arith.constant 0 : i32
    %20 = vector.broadcast %c0_i32_6 : i32 to vector<32x128xi32>
    %21 = arith.cmpi eq, %19, %20 : vector<32x128xi32>
    %cst = arith.constant 0.000000e+00 : f32
    %22 = vector.broadcast %cst : f32 to vector<32x128xf32>
    %23 = arith.select %21, %22, %2 : vector<32x128xi1>, vector<32x128xf32>
    %24 = tpu.concatenate %23, %0, %1 in 1 : vector<32x128xf32>, vector<32x128xf32>, vector<32x128xf32> -> vector<32x384xf32>
    %25 = arith.truncf %24 : vector<32x384xf32> to vector<32x384xbf16>
    %c0_7 = arith.constant 0 : index
    %c0_8 = arith.constant 0 : index
    %26 = vector.load %arg2[%c0_7, %c0_8] : memref<384x128xbf16, #tpu.memory_space<vmem>>, vector<384x128xbf16>
    %cst_9 = arith.constant dense<0.000000e+00> : vector<32x128xf32>
    %27 = tpu.matmul %25, %26, %cst_9 {dimension_numbers = #tpu.dot_dimension_numbers<[1], [0], [0], [1], [0, 0, 1, 1], [], []>} : vector<32x384xbf16>, vector<384x128xbf16>, vector<32x128xf32> -> vector<32x128xf32>
    %c0_10 = arith.constant 0 : index
    %c0_11 = arith.constant 0 : index
    %28 = vector.load %arg6[%c0_10, %c0_11] : memref<1x128xf32, #tpu.memory_space<vmem>>, vector<1x128xf32>
    %29 = vector.broadcast %28 : vector<1x128xf32> to vector<32x128xf32>
    %30 = arith.addf %27, %29 : vector<32x128xf32>
    %cst_12 = arith.constant 0.000000e+00 : f32
    %31 = vector.broadcast %cst_12 : f32 to vector<32x128xf32>
    %32 = arith.maximumf %30, %31 : vector<32x128xf32>
    %c0_13 = arith.constant 0 : index
    %c0_14 = arith.constant 0 : index
    %33 = vector.load %arg10[%c0_13, %c0_14] : memref<32x128xf32, #tpu.memory_space<vmem>>, vector<32x128xf32>
    tpu.vector_store %arg10[%c0_13, %c0_14], %32 {strides = array<i32>} : memref<32x128xf32, #tpu.memory_space<vmem>>, vector<32x128xf32>,
    %c0_15 = arith.constant 0 : index
    %c0_16 = arith.constant 0 : index
    %34 = tpu.strided_load %arg10[%c0_15, %c0_16] {strides = array<i32: 2, 1>} : memref<32x128xf32, #tpu.memory_space<vmem>>, vector<16x128xf32>
    %c1_17 = arith.constant 1 : index
    %c0_18 = arith.constant 0 : index
    %35 = tpu.strided_load %arg10[%c1_17, %c0_18] {strides = array<i32: 2, 1>} : memref<32x128xf32, #tpu.memory_space<vmem>>, vector<16x128xf32>
    %c1_i32_19 = arith.constant 1 : i32
    %36 = tpu.dynamic_rotate %35 by %c1_i32_19 dim 0 : vector<16x128xf32>, i32 -> vector<16x128xf32>
    %37 = tpu.iota {dimensions = array<i32: 0>} : vector<16x128xi32>
    %c8_i32 = arith.constant 8 : i32
    %c0_i32_20 = arith.constant 0 : i32
    %38 = arith.cmpi eq, %c8_i32, %c0_i32_20 : i32
    %c1_i32_21 = arith.constant 1 : i32
    %39 = arith.select %38, %c1_i32_21, %c8_i32 : i32
    %40 = vector.broadcast %39 : i32 to vector<16x128xi32>
    %41 = arith.remsi %37, %40 : vector<16x128xi32>
    %c0_i32_22 = arith.constant 0 : i32
    %42 = vector.broadcast %c0_i32_22 : i32 to vector<16x128xi32>
    %43 = arith.cmpi ne, %41, %42 : vector<16x128xi32>
    %c0_i32_23 = arith.constant 0 : i32
    %44 = vector.broadcast %c0_i32_23 : i32 to vector<16x128xi32>
    %45 = arith.cmpi slt, %41, %44 : vector<16x128xi32>
    %c0_i32_24 = arith.constant 0 : i32
    %46 = arith.cmpi slt, %39, %c0_i32_24 : i32
    %47 = vector.broadcast %46 : i1 to vector<16x128xi1>
    %48 = vector.broadcast %47 : vector<16x128xi1> to vector<16x128xi1>
    %49 = arith.xori %45, %48 : vector<16x128xi1>
    %50 = arith.andi %49, %43 : vector<16x128xi1>
    %51 = vector.broadcast %39 : i32 to vector<16x128xi32>
    %52 = arith.addi %41, %51 : vector<16x128xi32>
    %53 = arith.select %50, %52, %41 : vector<16x128xi1>, vector<16x128xi32>
    %c0_i32_25 = arith.constant 0 : i32
    %54 = vector.broadcast %c0_i32_25 : i32 to vector<16x128xi32>
    %55 = arith.cmpi eq, %53, %54 : vector<16x128xi32>
    %cst_26 = arith.constant 0.000000e+00 : f32
    %56 = vector.broadcast %cst_26 : f32 to vector<16x128xf32>
    %57 = arith.select %55, %56, %36 : vector<16x128xi1>, vector<16x128xf32>
    %58 = tpu.concatenate %57, %34, %35 in 1 : vector<16x128xf32>, vector<16x128xf32>, vector<16x128xf32> -> vector<16x384xf32>
    %59 = arith.truncf %58 : vector<16x384xf32> to vector<16x384xbf16>
    %c0_27 = arith.constant 0 : index
    %c0_28 = arith.constant 0 : index
    %60 = vector.load %arg3[%c0_27, %c0_28] : memref<384x128xbf16, #tpu.memory_space<vmem>>, vector<384x128xbf16>
    %cst_29 = arith.constant dense<0.000000e+00> : vector<16x128xf32>
    %61 = tpu.matmul %59, %60, %cst_29 {dimension_numbers = #tpu.dot_dimension_numbers<[1], [0], [0], [1], [0, 0, 1, 1], [], []>} : vector<16x384xbf16>, vector<384x128xbf16>, vector<16x128xf32> -> vector<16x128xf32>
    %c0_30 = arith.constant 0 : index
    %c0_31 = arith.constant 0 : index
    %62 = vector.load %arg7[%c0_30, %c0_31] : memref<1x128xf32, #tpu.memory_space<vmem>>, vector<1x128xf32>
    %63 = vector.broadcast %62 : vector<1x128xf32> to vector<16x128xf32>
    %64 = arith.addf %61, %63 : vector<16x128xf32>
    %cst_32 = arith.constant 0.000000e+00 : f32
    %65 = vector.broadcast %cst_32 : f32 to vector<16x128xf32>
    %66 = arith.maximumf %64, %65 : vector<16x128xf32>
    %c0_33 = arith.constant 0 : index
    %c0_34 = arith.constant 0 : index
    %67 = vector.load %arg11[%c0_33, %c0_34] : memref<16x128xf32, #tpu.memory_space<vmem>>, vector<16x128xf32>
    tpu.vector_store %arg11[%c0_33, %c0_34], %66 {strides = array<i32>} : memref<16x128xf32, #tpu.memory_space<vmem>>, vector<16x128xf32>,
    %c0_35 = arith.constant 0 : index
    %c0_36 = arith.constant 0 : index
    %68 = tpu.strided_load %arg11[%c0_35, %c0_36] {strides = array<i32: 2, 1>} : memref<16x128xf32, #tpu.memory_space<vmem>>, vector<8x128xf32>
    %c1_37 = arith.constant 1 : index
    %c0_38 = arith.constant 0 : index
    %69 = tpu.strided_load %arg11[%c1_37, %c0_38] {strides = array<i32: 2, 1>} : memref<16x128xf32, #tpu.memory_space<vmem>>, vector<8x128xf32>
    %c1_i32_39 = arith.constant 1 : i32
    %70 = tpu.dynamic_rotate %69 by %c1_i32_39 dim 0 : vector<8x128xf32>, i32 -> vector<8x128xf32>
    %71 = tpu.iota {dimensions = array<i32: 0>} : vector<8x128xi32>
    %c4_i32 = arith.constant 4 : i32
    %c0_i32_40 = arith.constant 0 : i32
    %72 = arith.cmpi eq, %c4_i32, %c0_i32_40 : i32
    %c1_i32_41 = arith.constant 1 : i32
    %73 = arith.select %72, %c1_i32_41, %c4_i32 : i32
    %74 = vector.broadcast %73 : i32 to vector<8x128xi32>
    %75 = arith.remsi %71, %74 : vector<8x128xi32>
    %c0_i32_42 = arith.constant 0 : i32
    %76 = vector.broadcast %c0_i32_42 : i32 to vector<8x128xi32>
    %77 = arith.cmpi ne, %75, %76 : vector<8x128xi32>
    %c0_i32_43 = arith.constant 0 : i32
    %78 = vector.broadcast %c0_i32_43 : i32 to vector<8x128xi32>
    %79 = arith.cmpi slt, %75, %78 : vector<8x128xi32>
    %c0_i32_44 = arith.constant 0 : i32
    %80 = arith.cmpi slt, %73, %c0_i32_44 : i32
    %81 = vector.broadcast %80 : i1 to vector<8x128xi1>
    %82 = vector.broadcast %81 : vector<8x128xi1> to vector<8x128xi1>
    %83 = arith.xori %79, %82 : vector<8x128xi1>
    %84 = arith.andi %83, %77 : vector<8x128xi1>
    %85 = vector.broadcast %73 : i32 to vector<8x128xi32>
    %86 = arith.addi %75, %85 : vector<8x128xi32>
    %87 = arith.select %84, %86, %75 : vector<8x128xi1>, vector<8x128xi32>
    %c0_i32_45 = arith.constant 0 : i32
    %88 = vector.broadcast %c0_i32_45 : i32 to vector<8x128xi32>
    %89 = arith.cmpi eq, %87, %88 : vector<8x128xi32>
    %cst_46 = arith.constant 0.000000e+00 : f32
    %90 = vector.broadcast %cst_46 : f32 to vector<8x128xf32>
    %91 = arith.select %89, %90, %70 : vector<8x128xi1>, vector<8x128xf32>
    %92 = tpu.concatenate %91, %68, %69 in 1 : vector<8x128xf32>, vector<8x128xf32>, vector<8x128xf32> -> vector<8x384xf32>
    %93 = arith.truncf %92 : vector<8x384xf32> to vector<8x384xbf16>
    %c0_47 = arith.constant 0 : index
    %c0_48 = arith.constant 0 : index
    %94 = vector.load %arg4[%c0_47, %c0_48] : memref<384x128xbf16, #tpu.memory_space<vmem>>, vector<384x128xbf16>
    %cst_49 = arith.constant dense<0.000000e+00> : vector<8x128xf32>
    %95 = tpu.matmul %93, %94, %cst_49 {dimension_numbers = #tpu.dot_dimension_numbers<[1], [0], [0], [1], [0, 0, 1, 1], [], []>} : vector<8x384xbf16>, vector<384x128xbf16>, vector<8x128xf32> -> vector<8x128xf32>
    %c0_50 = arith.constant 0 : index
    %c0_51 = arith.constant 0 : index
    %96 = vector.load %arg8[%c0_50, %c0_51] : memref<1x128xf32, #tpu.memory_space<vmem>>, vector<1x128xf32>
    %97 = vector.broadcast %96 : vector<1x128xf32> to vector<8x128xf32>
    %98 = arith.addf %95, %97 : vector<8x128xf32>
    %cst_52 = arith.constant 0.000000e+00 : f32
    %99 = vector.broadcast %cst_52 : f32 to vector<8x128xf32>
    %100 = arith.maximumf %98, %99 : vector<8x128xf32>
    %c0_53 = arith.constant 0 : index
    %c0_54 = arith.constant 0 : index
    %101 = vector.load %arg12[%c0_53, %c0_54] : memref<8x128xf32, #tpu.memory_space<vmem>>, vector<8x128xf32>
    tpu.vector_store %arg12[%c0_53, %c0_54], %100 {strides = array<i32>} : memref<8x128xf32, #tpu.memory_space<vmem>>, vector<8x128xf32>,
    %c0_55 = arith.constant 0 : index
    %c0_56 = arith.constant 0 : index
    %102 = tpu.strided_load %arg12[%c0_55, %c0_56] {strides = array<i32: 2, 1>} : memref<8x128xf32, #tpu.memory_space<vmem>>, vector<4x128xf32>
    %c1_57 = arith.constant 1 : index
    %c0_58 = arith.constant 0 : index
    %103 = tpu.strided_load %arg12[%c1_57, %c0_58] {strides = array<i32: 2, 1>} : memref<8x128xf32, #tpu.memory_space<vmem>>, vector<4x128xf32>
    %c1_i32_59 = arith.constant 1 : i32
    %104 = tpu.dynamic_rotate %103 by %c1_i32_59 dim 0 : vector<4x128xf32>, i32 -> vector<4x128xf32>
    %105 = tpu.iota {dimensions = array<i32: 0>} : vector<4x128xi32>
    %c2_i32 = arith.constant 2 : i32
    %c0_i32_60 = arith.constant 0 : i32
    %106 = arith.cmpi eq, %c2_i32, %c0_i32_60 : i32
    %c1_i32_61 = arith.constant 1 : i32
    %107 = arith.select %106, %c1_i32_61, %c2_i32 : i32
    %108 = vector.broadcast %107 : i32 to vector<4x128xi32>
    %109 = arith.remsi %105, %108 : vector<4x128xi32>
    %c0_i32_62 = arith.constant 0 : i32
    %110 = vector.broadcast %c0_i32_62 : i32 to vector<4x128xi32>
    %111 = arith.cmpi ne, %109, %110 : vector<4x128xi32>
    %c0_i32_63 = arith.constant 0 : i32
    %112 = vector.broadcast %c0_i32_63 : i32 to vector<4x128xi32>
    %113 = arith.cmpi slt, %109, %112 : vector<4x128xi32>
    %c0_i32_64 = arith.constant 0 : i32
    %114 = arith.cmpi slt, %107, %c0_i32_64 : i32
    %115 = vector.broadcast %114 : i1 to vector<4x128xi1>
    %116 = vector.broadcast %115 : vector<4x128xi1> to vector<4x128xi1>
    %117 = arith.xori %113, %116 : vector<4x128xi1>
    %118 = arith.andi %117, %111 : vector<4x128xi1>
    %119 = vector.broadcast %107 : i32 to vector<4x128xi32>
    %120 = arith.addi %109, %119 : vector<4x128xi32>
    %121 = arith.select %118, %120, %109 : vector<4x128xi1>, vector<4x128xi32>
    %c0_i32_65 = arith.constant 0 : i32
    %122 = vector.broadcast %c0_i32_65 : i32 to vector<4x128xi32>
    %123 = arith.cmpi eq, %121, %122 : vector<4x128xi32>
    %cst_66 = arith.constant 0.000000e+00 : f32
    %124 = vector.broadcast %cst_66 : f32 to vector<4x128xf32>
    %125 = arith.select %123, %124, %104 : vector<4x128xi1>, vector<4x128xf32>
    %126 = tpu.concatenate %125, %102, %103 in 1 : vector<4x128xf32>, vector<4x128xf32>, vector<4x128xf32> -> vector<4x384xf32>
    %127 = arith.truncf %126 : vector<4x384xf32> to vector<4x384xbf16>
    %c0_67 = arith.constant 0 : index
    %c0_68 = arith.constant 0 : index
    %128 = vector.load %arg5[%c0_67, %c0_68] : memref<384x128xbf16, #tpu.memory_space<vmem>>, vector<384x128xbf16>
    %cst_69 = arith.constant dense<0.000000e+00> : vector<4x128xf32>
    %129 = tpu.matmul %127, %128, %cst_69 {dimension_numbers = #tpu.dot_dimension_numbers<[1], [0], [0], [1], [0, 0, 1, 1], [], []>} : vector<4x384xbf16>, vector<384x128xbf16>, vector<4x128xf32> -> vector<4x128xf32>
    %c0_70 = arith.constant 0 : index
    %c0_71 = arith.constant 0 : index
    %130 = vector.load %arg9[%c0_70, %c0_71] : memref<1x128xf32, #tpu.memory_space<vmem>>, vector<1x128xf32>
    %131 = vector.broadcast %130 : vector<1x128xf32> to vector<4x128xf32>
    %132 = arith.addf %129, %131 : vector<4x128xf32>
    %cst_72 = arith.constant 0.000000e+00 : f32
    %133 = vector.broadcast %cst_72 : f32 to vector<4x128xf32>
    %134 = arith.maximumf %132, %133 : vector<4x128xf32>
    %c0_73 = arith.constant 0 : index
    %c0_74 = arith.constant 0 : index
    %135 = vector.load %arg13[%c0_73, %c0_74] : memref<4x128xf32, #tpu.memory_space<vmem>>, vector<4x128xf32>
    tpu.vector_store %arg13[%c0_73, %c0_74], %134 {strides = array<i32>} : memref<4x128xf32, #tpu.memory_space<vmem>>, vector<4x128xf32>,
    return
  }
  func.func @transform_0(%arg0: i32) -> (i32, i32) {
    %c0_i32 = arith.constant 0 : i32
    %c0_i32_0 = arith.constant 0 : i32
    %c0_i32_1 = arith.constant 0 : i32
    return %c0_i32, %c0_i32_0 : i32, i32
  }
  func.func @transform_1(%arg0: i32) -> (i32, i32) {
    %c0_i32 = arith.constant 0 : i32
    %c0_i32_0 = arith.constant 0 : i32
    %c0_i32_1 = arith.constant 0 : i32
    return %c0_i32, %c0_i32_0 : i32, i32
  }
  func.func @transform_2(%arg0: i32) -> (i32, i32) {
    %c0_i32 = arith.constant 0 : i32
    %c0_i32_0 = arith.constant 0 : i32
    %c0_i32_1 = arith.constant 0 : i32
    return %c0_i32, %c0_i32_0 : i32, i32
  }
  func.func @transform_3(%arg0: i32) -> (i32, i32) {
    %c0_i32 = arith.constant 0 : i32
    %c0_i32_0 = arith.constant 0 : i32
    %c0_i32_1 = arith.constant 0 : i32
    return %c0_i32, %c0_i32_0 : i32, i32
  }
  func.func @transform_4(%arg0: i32) -> (i32, i32) {
    %c0_i32 = arith.constant 0 : i32
    %c0_i32_0 = arith.constant 0 : i32
    %c0_i32_1 = arith.constant 0 : i32
    return %c0_i32, %c0_i32_0 : i32, i32
  }
  func.func @transform_5(%arg0: i32) -> (i32, i32) {
    %c0_i32 = arith.constant 0 : i32
    %c0_i32_0 = arith.constant 0 : i32
    %c0_i32_1 = arith.constant 0 : i32
    return %c0_i32, %c0_i32_0 : i32, i32
  }
  func.func @transform_6(%arg0: i32) -> (i32, i32) {
    %c0_i32 = arith.constant 0 : i32
    %c0_i32_0 = arith.constant 0 : i32
    %c0_i32_1 = arith.constant 0 : i32
    return %c0_i32, %c0_i32_0 : i32, i32
  }
  func.func @transform_7(%arg0: i32) -> (i32, i32) {
    %c0_i32 = arith.constant 0 : i32
    %c0_i32_0 = arith.constant 0 : i32
    %c0_i32_1 = arith.constant 0 : i32
    return %c0_i32, %c0_i32_0 : i32, i32
  }
  func.func @transform_8(%arg0: i32) -> (i32, i32) {
    %c0_i32 = arith.constant 0 : i32
    %c0_i32_0 = arith.constant 0 : i32
    %c0_i32_1 = arith.constant 0 : i32
    return %c0_i32, %c0_i32_0 : i32, i32
  }
  func.func @transform_9(%arg0: i32) -> (i32, i32) {
    %c0_i32 = arith.constant 0 : i32
    %c0_i32_0 = arith.constant 0 : i32
    %c0_i32_1 = arith.constant 0 : i32
    return %c0_i32, %c0_i32_0 : i32, i32
  }
  func.func @transform_10(%arg0: i32) -> (i32, i32) {
    %c0_i32 = arith.constant 0 : i32
    %c0_i32_0 = arith.constant 0 : i32
    %c0_i32_1 = arith.constant 0 : i32
    return %c0_i32, %c0_i32_0 : i32, i32
  }
  func.func @transform_11(%arg0: i32) -> (i32, i32) {
    %c0_i32 = arith.constant 0 : i32
    %c0_i32_0 = arith.constant 0 : i32
    %c0_i32_1 = arith.constant 0 : i32
    return %c0_i32, %c0_i32_0 : i32, i32
  }
  func.func @transform_12(%arg0: i32) -> (i32, i32) {
    %c0_i32 = arith.constant 0 : i32
    %c0_i32_0 = arith.constant 0 : i32
    %c0_i32_1 = arith.constant 0 : i32
    return %c0_i32, %c0_i32_0 : i32, i32
  }
}

</mosaic_0001>

<bundles_post_ra>
// kernel: tpu_custom_call.1
= control target key start
LH: loop header
LB: loop body
LE: loop exit
PB: predicated region body
PF: predicated region fallthrough
CT: control target
= control target key end

     0   :  { %18 = vsyncpa [#allocation3], 0  ;;  %s2485_s0 = inlined_call_operand.hbm [shape: f32[64,128], index: 0, kind: input, shape index: {}]   ;;  %s2486_s1 = inlined_call_operand.hbm [shape: bf16[384,128], index: 1, kind: input, shape index: {}]   ;;  %s2487_s2 = inlined_call_operand.hbm [shape: bf16[384,128], index: 2, kind: input, shape index: {}]   ;;  %s2488_s3 = inlined_call_operand.hbm [shape: bf16[384,128], index: 3, kind: input, shape index: {}]   ;;  %s2489_s4 = inlined_call_operand.hbm [shape: bf16[384,128], index: 4, kind: input, shape index: {}]   ;;  %s2490_s5 = inlined_call_operand.vmem [shape: f32[1,128], index: 5, kind: input, shape index: {}]   ;;  %s2491_s6 = inlined_call_operand.vmem [shape: f32[1,128], index: 6, kind: input, shape index: {}]   ;;  %s2492_s7 = inlined_call_operand.vmem [shape: f32[1,128], index: 7, kind: input, shape index: {}]   ;;  %s2493_s8 = inlined_call_operand.vmem [shape: f32[1,128], index: 8, kind: input, shape index: {}]   ;;  %s2494_s9 = inlined_call_operand.hbm [shape: f32[32,128], index: 9, kind: output, shape index: {0}]   ;;  %s2495_s10 = inlined_call_operand.hbm [shape: f32[16,128], index: 10, kind: output, shape index: {1}]   ;;  %s2496_s11 = inlined_call_operand.hbm [shape: f32[8,128], index: 11, kind: output, shape index: {2}]   ;;  %s2497_s12 = inlined_call_operand.hbm [shape: f32[4,128], index: 12, kind: output, shape index: {3}]  }
   0x1   :  { %19 = vsyncpa [#allocation6], 0 }
   0x2   :  { %20 = vsyncpa [#allocation9], 0 }
   0x3   :  { %21 = vsyncpa [#allocation4], 0 }
   0x4   :  { %22 = vsyncpa [#allocation13], 0 }
   0x5   :  { %23 = vsyncpa [#allocation16], 0  ;;  %s2166_s21 = smov [#allocation5]   ;;  %s1956_s25 = scalar_lea.hbm %s2486_s1, 3072 }
   0x6   :  { %s41_s22 = sshll.u32 %s2166_s21, 4  ;;  %p1957_p0 = scmp.ne.s32.totalorder %s2486_s1, %s1956_s25  ;;  %s42_s22 = int_to_ptr.vmem [resolvable:$true] %s41_s22 }
   0x7   :  { %p1960_p1 = scmp.lt.u32.totalorder %s1956_s25, %s2486_s1 }
   0x9   :  { %p1962_p2 = pnand %p1960_p1, %p1957_p0 }
   0xb   :  { %1965 = shalt.err (!%p1962_p2)
}
   0xc   :  { %s1966_s30 = scalar_lea.vmem %s42_s22, 3072  ;;  %p1971_p4 = scmp.lt.s32.totalorder %s42_s22, %s42_s22 }
   0xd   :  { %p1967_p3 = scmp.ne.s32.totalorder %s42_s22, %s1966_s30  ;;  %p1972_p5 = scmp.lt.s32.totalorder %s1966_s30, %s1966_s30 }
   0xf   :  { %p1973_p6 = por %p1972_p5, %p1971_p4 }
  0x11   :  { %p1974_p7 = pnand %p1973_p6, %p1967_p3 }
  0x13   :  { %1977 = shalt.err (!%p1974_p7)
}
  0x14   :  { %s2167_s13 = smov 64   ;;  %s2168_s14 = smov 4  }
  0x15   :  { %47 = dma.hbm_to_vmem [thread:$0]  %s2486_s1, 3072, %s42_s22, [#allocation6], %s2167_s13, %s2167_s13, %s2168_s14  }
  0x16   :  { %s2169_s17 = smov [#allocation8]   ;;  %s2170_s19 = smov [#allocation2]  }
  0x17   :  { %s65_s18 = sshll.u32 %s2169_s17, 4  ;;  %s29_s20 = sshll.u32 %s2170_s19, 4  ;;  %s66_s18 = int_to_ptr.vmem [resolvable:$true] %s65_s18  ;;  %s30_s20 = int_to_ptr.vmem [resolvable:$true] %s29_s20 }
  0x18   :  { %s1978_s24 = scalar_lea.hbm %s2488_s3, 3072 }
  0x19   :  { %p1979_p8 = scmp.ne.s32.totalorder %s2488_s3, %s1978_s24  ;;  %p1982_p9 = scmp.lt.u32.totalorder %s1978_s24, %s2488_s3 }
  0x1b   :  { %p1984_p10 = pnand %p1982_p9, %p1979_p8 }
  0x1d   :  { %1987 = shalt.err (!%p1984_p10)
}
  0x1e   :  { %s1988_s1 = scalar_lea.vmem %s66_s18, 3072  ;;  %p1993_p12 = scmp.lt.s32.totalorder %s66_s18, %s66_s18 }
  0x1f   :  { %p1989_p11 = scmp.ne.s32.totalorder %s66_s18, %s1988_s1  ;;  %p1994_p13 = scmp.lt.s32.totalorder %s1988_s1, %s1988_s1 }
  0x21   :  { %p1995_p0 = por %p1994_p13, %p1993_p12 }
  0x23   :  { %p1996_p1 = pnand %p1995_p0, %p1989_p11 }
  0x25   :  { %1999 = shalt.err (!%p1996_p1)
}
  0x26   :  { %71 = dma.hbm_to_vmem [thread:$0]  %s2488_s3, 3072, %s66_s18, [#allocation9], %s2167_s13, %s2167_s13, %s2168_s14  }
  0x27   :  { %s2000_s16 = scalar_lea.hbm %s2485_s0, 1024 }
  0x28   :  { %p2001_p2 = scmp.ne.s32.totalorder %s2485_s0, %s2000_s16  ;;  %p2004_p3 = scmp.lt.u32.totalorder %s2000_s16, %s2485_s0 }
  0x2a   :  { %p2006_p4 = pnand %p2004_p3, %p2001_p2 }
  0x2c   :  { %2009 = shalt.err (!%p2006_p4)
}
  0x2d   :  { %s2010_s24 = scalar_lea.vmem %s30_s20, 1024  ;;  %p2015_p6 = scmp.lt.s32.totalorder %s30_s20, %s30_s20 }
  0x2e   :  { %p2011_p5 = scmp.ne.s32.totalorder %s30_s20, %s2010_s24  ;;  %p2016_p7 = scmp.lt.s32.totalorder %s2010_s24, %s2010_s24 }
  0x30   :  { %p2017_p8 = por %p2016_p7, %p2015_p6 }
  0x32   :  { %p2018_p9 = pnand %p2017_p8, %p2011_p5 }
  0x34   :  { %2021 = shalt.err (!%p2018_p9)
}
  0x35   :  { %s2171_s3 = smov 128   ;;  %s2172_s18 = smov 8  }
  0x36   :  { %35 = dma.hbm_to_vmem [thread:$0]  %s2485_s0, 1024, %s30_s20, [#allocation3], %s2171_s3, %s2171_s3, %s2172_s18  }
  0x37   :  { %s2173_s27 = smov [#allocation7]   ;;  %s2174_s1 = smov [#allocation10]  }
  0x38   :  { %s53_s28 = sshll.u32 %s2173_s27, 4  ;;  %s77_s22 = sshll.u32 %s2174_s1, 4  ;;  %s54_s28 = int_to_ptr.vmem [resolvable:$true] %s53_s28  ;;  %s78_s22 = int_to_ptr.vmem [resolvable:$true] %s77_s22 }
  0x39   :  { %s2022_s15 = scalar_lea.hbm %s2487_s2, 3072 }
  0x3a   :  { %p2023_p10 = scmp.ne.s32.totalorder %s2487_s2, %s2022_s15  ;;  %p2026_p11 = scmp.lt.u32.totalorder %s2022_s15, %s2487_s2 }
  0x3c   :  { %p2028_p12 = pnand %p2026_p11, %p2023_p10 }
  0x3e   :  { %2031 = shalt.err (!%p2028_p12)
}
  0x3f   :  { %s2032_s0 = scalar_lea.vmem %s54_s28, 3072  ;;  %p2037_p0 = scmp.lt.s32.totalorder %s54_s28, %s54_s28 }
  0x40   :  { %p2033_p13 = scmp.ne.s32.totalorder %s54_s28, %s2032_s0  ;;  %p2038_p1 = scmp.lt.s32.totalorder %s2032_s0, %s2032_s0 }
  0x42   :  { %p2039_p2 = por %p2038_p1, %p2037_p0 }
  0x44   :  { %p2040_p3 = pnand %p2039_p2, %p2033_p13 }
  0x46   :  { %2043 = shalt.err (!%p2040_p3)
}
  0x47   :  { %59 = dma.hbm_to_vmem [thread:$0]  %s2487_s2, 3072, %s54_s28, [#allocation6], %s2167_s13, %s2167_s13, %s2168_s14  }
  0x48   :  { %s2044_s26 = scalar_lea.hbm %s2489_s4, 3072 }
  0x49   :  { %p2045_p4 = scmp.ne.s32.totalorder %s2489_s4, %s2044_s26  ;;  %p2048_p5 = scmp.lt.u32.totalorder %s2044_s26, %s2489_s4 }
  0x4b   :  { %p2050_p6 = pnand %p2048_p5, %p2045_p4 }
  0x4d   :  { %2053 = shalt.err (!%p2050_p6)
}
  0x4e   :  { %s2054_s15 = scalar_lea.vmem %s78_s22, 3072  ;;  %p2059_p8 = scmp.lt.s32.totalorder %s78_s22, %s78_s22 }
  0x4f   :  { %p2055_p7 = scmp.ne.s32.totalorder %s78_s22, %s2054_s15  ;;  %p2060_p9 = scmp.lt.s32.totalorder %s2054_s15, %s2054_s15 }
  0x51   :  { %p2061_p10 = por %p2060_p9, %p2059_p8 }
  0x53   :  { %p2062_p11 = pnand %p2061_p10, %p2055_p7 }
  0x55   :  { %2065 = shalt.err (!%p2062_p11)
}
  0x56   :  { %83 = dma.hbm_to_vmem [thread:$0]  %s2489_s4, 3072, %s78_s22, [#allocation9], %s2167_s13, %s2167_s13, %s2168_s14  }
  0x57   :  { %2154 = dma.done.wait [#allocation3], 1024  }
  0x58   :  { %2155 = vsyncadd [#allocation3], 4294966272 }
  0x59   :  { %2156 = dma.done.wait [#allocation6], 6144  }
  0x5a   :  { %2157 = vsyncadd [#allocation6], 4294961152 }
  0x5b   :  { %2158 = dma.done.wait [#allocation9], 6144  }
  0x5c   :  { %2159 = vsyncadd [#allocation9], 4294961152  ;;  %v1860_v0 = vld [vmem:[#allocation5 + $0x40] sm:$0xff]   ;;  %v1862_v2 = vld [vmem:[#allocation5 + $0x48] sm:$0xff]   ;;  %v127_v10 = vlaneseq  ;;  %vm2175_vm2 = vmmov 1   ;;  %v2176_v54 = vmov 0.0  }
  0x5d   :  { %v1861_v1 = vld [vmem:[#allocation5] sm:$0xff]   ;;  %1633 = vmatprep.subr.bf16.mxu0 %v1860_v0  ;;  %v1864_v4 = vld [vmem:[#allocation5 + $0x8] sm:$0xff]   ;;  %v1865_v5 = vld [vmem:[#allocation5 + $0x50] sm:$0xff]   ;;  %vm2177_vm6 = vmmov 0   ;;  %vm1136_vm12 = vcmask 1047556   ;;  %s2179_s17 = smov [#allocation11]  }
  0x5e   :  { %1634 = vmatpush3.bf16.msra.mxu0 %v1861_v1  ;;  %v1863_v3 = vld [vmem:[#allocation5 + $0x80] sm:$0xff]   ;;  %v1866_v6 = vld [vmem:[#allocation5 + $0x88] sm:$0xff]   ;;  %v1867_v7 = vld [vmem:[#allocation5 + $0x10] sm:$0xff]   ;;  %v2322_v14 = vshrl.u32 %v127_v10, 7  ;;  %s1447_s19 = sshll.u32 %s2179_s17, 4  ;;  %s2421_s19 = int_to_ptr.vmem [resolvable:$true] %s1447_s19 }
  0x5f   :  { %1635 = vmatprep.subr.bf16.mxu0 %v1862_v2  ;;  %1764 = vmatprep.subr.bf16.mxu1 %v1863_v3  ;;  %v1868_v8 = vld [vmem:[#allocation5 + $0x58] sm:$0xff]   ;;  %v1869_v9 = vld [vmem:[#allocation5 + $0x90] sm:$0xff]   ;;  %v1871_v12 = vld [vmem:[#allocation5 + $0x60] sm:$0xff]  }
  0x60   :  { %1765 = vmatpush3.bf16.msra.mxu1 %v1863_v3  ;;  %v1870_v11 = vld [vmem:[#allocation5 + $0x18] sm:$0xff]   ;;  %v1873_v15 = vld [vmem:[#allocation5 + $0x20] sm:$0xff]   ;;  %v1874_v17 = vld [vmem:[#allocation5 + $0x68] sm:$0xff]   ;;  %v141_v18 = vand.u32 15, %v2322_v14  ;;  %v135_v20 = vadd.s32 16, %v2322_v14  ;;  %vm129_vm0 = vcmp.lt.s32.totalorder %v2322_v14, 1 }
  0x61   :  { %1766 = vmatprep.subr.bf16.mxu1 %v1866_v6  ;;  %v1872_v13 = vld [vmem:[#allocation5 + $0x98] sm:$0xff]   ;;  %v1875_v16 = vld [vmem:[#allocation5 + $0xa0] sm:$0xff]   ;;  %v1876_v19 = vld [vmem:[#allocation5 + $0x28] sm:$0xff]  }
  0x62   :  { %1636 = vmatpush3.bf16.msra.mxu0 %v1864_v4  ;;  %v1878_v21 = vld [vmem:[#allocation5 + $0xa8] sm:$0xff]   ;;  %v1877_v22 = vld [vmem:[#allocation5 + $0x70] sm:$0xff]   ;;  %vm2327_vm1 = vcmp.ne.s32.totalorder %v141_v18, 0  ;;  %v155_v26 = vand.u32 15, %v135_v20  ;;  %v1880_v30 = vld [vmem:[#allocation5 + $0x78] sm:$0xff]  }
  0x63   :  { %1637 = vmatprep.subr.bf16.mxu0 %v1865_v5  ;;  %v1879_v23 = vld [vmem:[#allocation5 + $0x30] sm:$0xff]   ;;  %v108_v27 = vld [vmem:[#allocation2] ss:$2 sm:$0xff]  ;;  %v116_v29 = vld [vmem:[#allocation2 + $0x1] ss:$2 sm:$0xff] }
  0x64   :  { %1767 = vmatpush3.bf16.msra.mxu1 %v1866_v6  ;;  %v1881_v25 = vld [vmem:[#allocation5 + $0xb0] sm:$0xff]   ;;  %v123_v34 = vrot.slane %v116_v29, 7  ;;  %v1882_v35 = vld [vmem:[#allocation5 + $0x38] sm:$0xff]   ;;  %vm2334_vm3 = vmpackc.low %vm2175_vm2, %vm2327_vm1  ;;  %vm2338_vm4 = vcmp.ne.s32.totalorder %v155_v26, 0 }
  0x65   :  { %1768 = vmatprep.subr.bf16.mxu1 %v1869_v9  ;;  %v110_v28 = vld [vmem:[#allocation2 + $0x10] ss:$2 sm:$0xff]  ;;  %v118_v32 = vld [vmem:[#allocation2 + $0x11] ss:$2 sm:$0xff]  ;;  %v120_v40 = vld [vmem:[#allocation2 + $0x21] ss:$2 sm:$0xff] }
  0x66   :  { %1638 = vmatpush3.bf16.msra.mxu0 %v1867_v7  ;;  %v194_v31 = vpack.c.bf16 %v110_v28, %v108_v27  ;;  %v122_v33 = vld [vmem:[#allocation2 + $0x31] ss:$2 sm:$0xff]  ;;  %v124_v36 = vrot.slane %v118_v32, 7  ;;  %v195_v38 = vpack.c.bf16 %v118_v32, %v116_v29  ;;  %v112_v41 = vld [vmem:[#allocation2 + $0x20] ss:$2 sm:$0xff]  ;;  %v125_v46 = vrot.slane %v120_v40, 7  ;;  %vm1534_vm5 = vmpackc.low %vm2175_vm2, %vm2338_vm4 }
  0x67   :  { %1639 = vmatprep.subr.bf16.mxu0 %v1868_v8  ;;  %v126_v37 = vrot.slane %v122_v33, 7  ;;  %v1883_v45 = vld [vmem:[#allocation5 + $0xb8] sm:$0xff]   ;;  %v1884_v50 = vld [vmem:[#allocation7 + $0x80] sm:$0xff]   ;;  %v198_v51 = vpack.c.bf16 %v122_v33, %v120_v40  ;;  %v1887_v58 = vld [vmem:[#allocation7 + $0x88] sm:$0xff]  }
  0x68   :  { %1769 = vmatpush3.bf16.msra.mxu1 %v1869_v9  ;;  %430 = vmatprep.mubr.bf16.mxu0 %v194_v31  ;;  %v132_v43 = vsel %vm129_vm0, %v123_v34, %v124_v36  ;;  %v114_v47 = vld [vmem:[#allocation2 + $0x30] ss:$2 sm:$0xff]  ;;  %v131_v53 = vsel %vm129_vm0, %v124_v36, %v125_v46  ;;  %v1885_v56 = vld [vmem:[#allocation7 + $0x40] sm:$0xff]   ;;  %v1888_v59 = vld [vmem:[#allocation7 + $0x48] sm:$0xff]  }
  0x69   :  { %1770 = vmatprep.subr.bf16.mxu1 %v1872_v13  ;;  %v133_v44 = vsel %vm129_vm0, %v126_v37, %v123_v34  ;;  %1780 = vmatprep.mubr.bf16.mxu1 %v195_v38  ;;  %v197_v49 = vpack.c.bf16 %v114_v47, %v112_v41  ;;  %v130_v52 = vsel %vm129_vm0, %v125_v46, %v126_v37  ;;  %v1886_v57 = vld [vmem:[#allocation7] sm:$0xff]   ;;  %v1889_v60 = vld [vmem:[#allocation7 + $0x8] sm:$0xff]   ;;  %v1890_v61 = vld [vmem:[#allocation7 + $0x90] sm:$0xff]   ;;  %v134_v46 = vadd.s32 8, %v2322_v14 }
  0x6a   :  { %1640 = vmatpush3.bf16.msra.mxu0 %v1870_v11  ;;  %v1531_v48 = vpack.c.bf16 %v132_v43, %v133_v44  ;;  %v1535_v55 = vpack.c.bf16 %v130_v52, %v131_v53  ;;  %v1891_v62 = vld [vmem:[#allocation7 + $0x50] sm:$0xff]   ;;  %v1893_v0 = vld [vmem:[#allocation7 + $0x98] sm:$0xff]   ;;  %v1896_v3 = vld [vmem:[#allocation7 + $0xa0] sm:$0xff]   ;;  %v519_v47 = vand.u32 7, %v2322_v14 }
  0x6b   :  { %1641 = vmatprep.subr.bf16.mxu0 %v1871_v12  ;;  %v1892_v63 = vld [vmem:[#allocation7 + $0x10] sm:$0xff]   ;;  %v1894_v1 = vld [vmem:[#allocation7 + $0x58] sm:$0xff]   ;;  %v1897_v4 = vld [vmem:[#allocation7 + $0x60] sm:$0xff]  }
  0x6c   :  { %1771 = vmatpush3.bf16.msra.mxu1 %v1872_v13  ;;  %v1895_v2 = vld [vmem:[#allocation7 + $0x18] sm:$0xff]   ;;  %v1898_v5 = vld [vmem:[#allocation7 + $0x20] sm:$0xff]   ;;  %v1899_v6 = vld [vmem:[#allocation7 + $0xa8] sm:$0xff]   ;;  %vm2375_vm8 = vcmp.ne.s32.totalorder %v519_v47, 0 }
  0x6d   :  { %1772 = vmatprep.subr.bf16.mxu1 %v1875_v16  ;;  %v1900_v7 = vld [vmem:[#allocation7 + $0x68] sm:$0xff]   ;;  %v1902_v9 = vld [vmem:[#allocation7 + $0xb0] sm:$0xff]   ;;  %v1905_v12 = vld [vmem:[#allocation7 + $0xb8] sm:$0xff]  }
  0x6e   :  { %1642 = vmatpush3.bf16.msra.mxu0 %v1873_v15  ;;  %v1901_v8 = vld [vmem:[#allocation7 + $0x28] sm:$0xff]   ;;  %v1903_v10 = vld [vmem:[#allocation7 + $0x70] sm:$0xff]   ;;  %v1906_v13 = vld [vmem:[#allocation7 + $0x78] sm:$0xff]  }
  0x6f   :  { %1643 = vmatprep.subr.bf16.mxu0 %v1874_v17  ;;  %v1904_v11 = vld [vmem:[#allocation7 + $0x30] sm:$0xff]   ;;  %v1907_v15 = vld [vmem:[#allocation7 + $0x38] sm:$0xff]   ;;  %v1908_v52 = vld [vmem:[#allocation8 + $0x80] sm:$0xff]  }
  0x70   :  { %1773 = vmatpush3.bf16.msra.mxu1 %v1875_v16  ;;  %v1909_v16 = vld [vmem:[#allocation8 + $0x40] sm:$0xff]  }
  0x71   :  { %1774 = vmatprep.subr.bf16.mxu1 %v1878_v21 }
  0x72   :  { %1644 = vmatpush3.bf16.msra.mxu0 %v1876_v19  ;;  %v1504_v19 = vld [vmem:[%s2490_s5] ss:$0 sm:$0xff] }
  0x73   :  { %1645 = vmatprep.subr.bf16.mxu0 %v1877_v22 }
  0x74   :  { %1775 = vmatpush3.bf16.msra.mxu1 %v1878_v21 }
  0x75   :  { %1776 = vmatprep.subr.bf16.mxu1 %v1881_v25 }
  0x76   :  { %1646 = vmatpush3.bf16.msra.mxu0 %v1879_v23 }
  0x77   :  { %1647 = vmatprep.subr.bf16.mxu0 %v1880_v30 }
  0x78   :  { %1777 = vmatpush3.bf16.msra.mxu1 %v1881_v25 }
  0x79   :  { %1778 = vmatprep.subr.bf16.mxu1 %v1883_v45 }
  0x7a   :  { %1648 = vmatpush3.bf16.msra.mxu0 %v1882_v35 }
  0x7b   :  { %1671 = vmatprep.subr.bf16.mxu0 %v1885_v56 }
  0x7c   :  { %1779 = vmatpush3.bf16.msra.mxu1 %v1883_v45 }
  0x7d   :  { %1532 = vmatmul.mubr.msk.bf16.vlgmr.msra.gmra.mrb[0].mxu0 %vm2334_vm3, %v1531_v48  ;;  %1784 = vmatprep.subr.bf16.mxu1 %v2176_v54  ;;  %v526_v48 = vand.u32 7, %v134_v46 }
  0x7e   :  { %438 = vmatprep.mubr.bf16.mxu0 %v197_v49  ;;  %1672 = vmatpush3.bf16.msra.mxu0 %v1886_v57 }
  0x7f   :  { %1781 = vmatmul.mubr.bf16.vlgmr.msra.gmra.mrb[0].mxu1 %v198_v51  ;;  %1673 = vmatprep.subr.bf16.mxu0 %v1888_v59  ;;  %vm2371_vm7 = vcmp.ne.s32.totalorder %v526_v48, 0  ;;  %v1933_v51 = vld [vmem:[#allocation10 + $0x88] sm:$0xff]  }
  0x80   :  { %1785 = vmatpush3.bf16.msra.mxu1 %v1884_v50  ;;  %1800 = vmatprep.mubr.msk.bf16.mxu1 %vm2177_vm6, %v2176_v54  ;;  %vm1564_vm9 = vmpackc.low %vm2371_vm7, %vm2375_vm8 }
  0x81   :  { %1786 = vmatprep.subr.bf16.mxu1 %v2176_v54 }
  0x82   :  { %1674 = vmatpush3.bf16.msra.mxu0 %v1889_v60 }
  0x83   :  { %1675 = vmatprep.subr.bf16.mxu0 %v1891_v62 }
  0x84   :  { %1787 = vmatpush3.bf16.msra.mxu1 %v1887_v58 }
  0x85   :  { %1536 = vmatmul.mubr.msk.bf16.gmra.mrb[4].mxu0 %vm1534_vm5, %v1535_v55  ;;  %1788 = vmatprep.subr.bf16.mxu1 %v2176_v54 }
  0x86   :  { %1676 = vmatpush3.bf16.msra.mxu0 %v1892_v63  ;;  %v1910_v63 = vld [vmem:[#allocation8] sm:$0xff]  }
  0x87   :  { %1677 = vmatprep.subr.bf16.mxu0 %v1894_v1  ;;  %v1911_v1 = vld [vmem:[#allocation8 + $0x88] sm:$0xff]  }
  0x88   :  { %1789 = vmatpush3.bf16.msra.mxu1 %v1890_v61 }
  0x89   :  { %1790 = vmatprep.subr.bf16.mxu1 %v2176_v54 }
  0x8a   :  { %1678 = vmatpush3.bf16.msra.mxu0 %v1895_v2  ;;  %v1912_v2 = vld [vmem:[#allocation8 + $0x48] sm:$0xff]  }
  0x8b   :  { %1679 = vmatprep.subr.bf16.mxu0 %v1897_v4  ;;  %v1914_v4 = vld [vmem:[#allocation8 + $0x90] sm:$0xff]  }
  0x8c   :  { %1791 = vmatpush3.bf16.msra.mxu1 %v1893_v0 }
  0x8d   :  { %1792 = vmatprep.subr.bf16.mxu1 %v2176_v54 }
  0x8e   :  { %1680 = vmatpush3.bf16.msra.mxu0 %v1898_v5  ;;  %v1915_v5 = vld [vmem:[#allocation8 + $0x50] sm:$0xff]  }
  0x8f   :  { %1681 = vmatprep.subr.bf16.mxu0 %v1900_v7  ;;  %v1917_v7 = vld [vmem:[#allocation8 + $0x98] sm:$0xff]  }
  0x90   :  { %1793 = vmatpush3.bf16.msra.mxu1 %v1896_v3  ;;  %v1913_v3 = vld [vmem:[#allocation8 + $0x8] sm:$0xff]  }
  0x91   :  { %1794 = vmatprep.subr.bf16.mxu1 %v2176_v54 }
  0x92   :  { %1682 = vmatpush3.bf16.msra.mxu0 %v1901_v8  ;;  %v1918_v8 = vld [vmem:[#allocation8 + $0x58] sm:$0xff]  }
  0x93   :  { %1683 = vmatprep.subr.bf16.mxu0 %v1903_v10  ;;  %v1920_v10 = vld [vmem:[#allocation8 + $0xa0] sm:$0xff]  }
  0x94   :  { %1795 = vmatpush3.bf16.msra.mxu1 %v1899_v6  ;;  %v1916_v6 = vld [vmem:[#allocation8 + $0x10] sm:$0xff]  }
  0x95   :  { %1796 = vmatprep.subr.bf16.mxu1 %v2176_v54 }
  0x96   :  { %1684 = vmatpush3.bf16.msra.mxu0 %v1904_v11  ;;  %v1921_v11 = vld [vmem:[#allocation8 + $0x60] sm:$0xff]  }
  0x97   :  { %1685 = vmatprep.subr.bf16.mxu0 %v1906_v13  ;;  %v1923_v13 = vld [vmem:[#allocation8 + $0xa8] sm:$0xff]  }
  0x98   :  { %1797 = vmatpush3.bf16.msra.mxu1 %v1902_v9  ;;  %v1919_v9 = vld [vmem:[#allocation8 + $0x18] sm:$0xff]  }
  0x99   :  { %1798 = vmatprep.subr.bf16.mxu1 %v2176_v54 }
  0x9a   :  { %1686 = vmatpush3.bf16.msra.mxu0 %v1907_v15  ;;  %v1924_v15 = vld [vmem:[#allocation8 + $0x68] sm:$0xff]  }
  0x9b   :  { %1702 = vmatprep.subr.bf16.mxu0 %v1909_v16  ;;  %v1925_v16 = vld [vmem:[#allocation8 + $0x28] sm:$0xff]  }
  0x9c   :  { %1799 = vmatpush3.bf16.msra.mxu1 %v1905_v12  ;;  %v1922_v12 = vld [vmem:[#allocation8 + $0x20] sm:$0xff]  }
  0x9d   :  { %1804 = vmatprep.subr.bf16.mxu1 %v2176_v54 }
 0x150   :  { %v1649_v17 = vpop.f32.mrb[0].mxu0 }
 0x151   :  { %v1650_v18 = vpop.f32.mrb[1].mxu0 }
 0x152   :  { %v1651_v20 = vadd.f32 %v1650_v18, %v1649_v17  ;;  %v1652_v21 = vpop.f32.mrb[2].mxu0  ;;  %v1782_v23 = vpop.f32.mrb[0].mxu1  ;;  %v1926_v17 = vld [vmem:[#allocation8 + $0xb0] sm:$0xff]  }
 0x153   :  { %v1653_v22 = vpop.f32.mrb[3].mxu0  ;;  %v481_v26 = vpop.f32.mrb[1].mxu1  ;;  %v1927_v18 = vld [vmem:[#allocation8 + $0x70] sm:$0xff]  }
 0x154   :  { %v1654_v24 = vadd.f32 %v1653_v22, %v1652_v21  ;;  %v433_v25 = vadd.f32 %v1651_v20, %v1504_v19  ;;  %v1783_v27 = vpop.f32.mrb[2].mxu1  ;;  %v1930_v20 = vld [vmem:[#allocation8 + $0x78] sm:$0xff]  }
 0x155   :  { %v484_v30 = vpop.f32.mrb[3].mxu1  ;;  %v1929_v21 = vld [vmem:[#allocation8 + $0xb8] sm:$0xff]  }
 0x156   :  { %v482_v28 = vadd.f32 %v481_v26, %v433_v25  ;;  %v436_v29 = vadd.f32 %v1654_v24, %v1504_v19  ;;  %v1931_v22 = vld [vmem:[#allocation8 + $0x38] sm:$0xff]  }
 0x158   :  { %v496_v31 = vmax.f32 %v482_v28, 0.0  ;;  %v485_v32 = vadd.f32 %v484_v30, %v436_v29  ;;  %v1655_v33 = vpop.f32.mrb[4].mxu0  ;;  %v1537_v29 = vld [vmem:[%s2491_s6] ss:$0 sm:$0xff] }
 0x159   :  { %v1656_v34 = vpop.f32.mrb[5].mxu0 }
 0x15a   :  { %500 = vst [vmem:[#allocation11] sm:$0xff] %v496_v31  ;;  %v497_v35 = vmax.f32 %v485_v32, 0.0  ;;  %v1657_v36 = vadd.f32 %v1656_v34, %v1655_v33  ;;  %v1658_v37 = vpop.f32.mrb[6].mxu0 }
 0x15b   :  { %v1659_v38 = vpop.f32.mrb[7].mxu0 }
 0x15c   :  { %501 = vst [vmem:[#allocation11 + $0x8] sm:$0xff] %v497_v35  ;;  %v441_v39 = vadd.f32 %v1657_v36, %v1504_v19  ;;  %v1660_v40 = vadd.f32 %v1659_v38, %v1658_v37 }
 0x15e   :  { %v490_v41 = vadd.f32 %v1782_v23, %v441_v39  ;;  %v444_v42 = vadd.f32 %v1660_v40, %v1504_v19  ;;  %v1928_v19 = vld [vmem:[#allocation8 + $0x30] sm:$0xff]   ;;  %v1934_v23 = vld [vmem:[#allocation10 + $0x40] sm:$0xff]  }
 0x160   :  { %v498_v43 = vmax.f32 %v490_v41, 0.0  ;;  %v493_v44 = vadd.f32 %v1783_v27, %v444_v42  ;;  %v839_v41 = vand.u32 3, %v2322_v14 }
 0x162   :  { %502 = vst [vmem:[#allocation11 + $0x10] sm:$0xff] %v498_v43  ;;  %v499_v45 = vmax.f32 %v493_v44, 0.0  ;;  %vm2401_vm10 = vcmp.ne.s32.totalorder %v839_v41, 0 }
 0x163   :  { %v508_v49 = vld [vmem:[#allocation11 + $0x1] ss:$2 sm:$0xff]  ;;  %v504_v53 = vld [vmem:[#allocation11] ss:$2 sm:$0xff]  ;;  %vm1594_vm11 = vmpackc.low %vm2401_vm10, %vm2401_vm10 }
 0x164   :  { %503 = vst [vmem:[#allocation11 + $0x18] sm:$0xff] %v499_v45  ;;  %v511_v58 = vrot.slane %v508_v49, 7  ;;  %v1932_v45 = vld [vmem:[#allocation10 + $0x80] sm:$0xff]  }
 0x16b   :  { %v506_v55 = vld [vmem:[#allocation11 + $0x10] ss:$2 sm:$0xff]  ;;  %v510_v56 = vld [vmem:[#allocation11 + $0x11] ss:$2 sm:$0xff] }
 0x16c   :  { %v544_v57 = vpack.c.bf16 %v506_v55, %v504_v53  ;;  %v512_v59 = vrot.slane %v510_v56, 7  ;;  %v545_v60 = vpack.c.bf16 %v510_v56, %v508_v49  ;;  %v1935_v49 = vld [vmem:[#allocation10] sm:$0xff]   ;;  %v1937_v53 = vld [vmem:[#allocation10 + $0x48] sm:$0xff]   ;;  %v1939_v56 = vld [vmem:[#allocation10 + $0x98] sm:$0xff]  }
 0x16d   :  { %v1938_v55 = vld [vmem:[#allocation10 + $0x8] sm:$0xff]  }
 0x16e   :  { %777 = vmatprep.mubr.bf16.mxu0 %v544_v57  ;;  %v513_v61 = vsel %vm129_vm0, %v511_v58, %v512_v59  ;;  %v514_v62 = vsel %vm129_vm0, %v512_v59, %v511_v58  ;;  %1801 = vmatmul.mubr.bf16.vlgmr.msra.gmra.mrb[4].mxu1 %v545_v60  ;;  %v1940_v57 = vld [vmem:[#allocation10 + $0x50] sm:$0xff]   ;;  %v1942_v59 = vld [vmem:[#allocation10 + $0xa0] sm:$0xff]   ;;  %v1943_v60 = vld [vmem:[#allocation10 + $0x58] sm:$0xff]  }
 0x16f   :  { %v1565_v0 = vpack.c.bf16 %v513_v61, %v514_v62  ;;  %1805 = vmatpush3.bf16.msra.mxu1 %v1908_v52  ;;  %1820 = vmatprep.mubr.msk.bf16.mxu1 %vm2177_vm6, %v2176_v54  ;;  %v1936_v52 = vld [vmem:[#allocation10 + $0x90] sm:$0xff]   ;;  %v1944_v61 = vld [vmem:[#allocation10 + $0x18] sm:$0xff]   ;;  %v1945_v62 = vld [vmem:[#allocation10 + $0xa8] sm:$0xff]  }
 0x170   :  { %1806 = vmatprep.subr.bf16.mxu1 %v2176_v54  ;;  %v1941_v58 = vld [vmem:[#allocation10 + $0x10] sm:$0xff]  }
 0x171   :  { %1566 = vmatmul.mubr.msk.bf16.vlgmr.msra.gmra.mrb[8].mxu0 %vm1564_vm9, %v1565_v0  ;;  %v1947_v0 = vld [vmem:[#allocation10 + $0x20] sm:$0xff]  }
 0x172   :  { %1703 = vmatpush3.bf16.msra.mxu0 %v1910_v63  ;;  %v1946_v63 = vld [vmem:[#allocation10 + $0x60] sm:$0xff]  }
 0x173   :  { %1807 = vmatpush3.bf16.msra.mxu1 %v1911_v1  ;;  %1704 = vmatprep.subr.bf16.mxu0 %v1912_v2  ;;  %v1948_v1 = vld [vmem:[#allocation10 + $0xb0] sm:$0xff]   ;;  %v1949_v2 = vld [vmem:[#allocation10 + $0x68] sm:$0xff]  }
 0x174   :  { %1808 = vmatprep.subr.bf16.mxu1 %v2176_v54 }
 0x176   :  { %1705 = vmatpush3.bf16.msra.mxu0 %v1913_v3  ;;  %v1950_v3 = vld [vmem:[#allocation10 + $0x28] sm:$0xff]  }
 0x177   :  { %1809 = vmatpush3.bf16.msra.mxu1 %v1914_v4  ;;  %1706 = vmatprep.subr.bf16.mxu0 %v1915_v5  ;;  %v1951_v4 = vld [vmem:[#allocation10 + $0xb8] sm:$0xff]   ;;  %v1952_v5 = vld [vmem:[#allocation10 + $0x70] sm:$0xff]  }
 0x178   :  { %1810 = vmatprep.subr.bf16.mxu1 %v2176_v54 }
 0x17a   :  { %1707 = vmatpush3.bf16.msra.mxu0 %v1916_v6  ;;  %v1953_v6 = vld [vmem:[#allocation10 + $0x30] sm:$0xff]  }
 0x17b   :  { %1811 = vmatpush3.bf16.msra.mxu1 %v1917_v7  ;;  %1708 = vmatprep.subr.bf16.mxu0 %v1918_v8  ;;  %v1954_v7 = vld [vmem:[#allocation10 + $0x78] sm:$0xff]  }
 0x17c   :  { %1812 = vmatprep.subr.bf16.mxu1 %v2176_v54  ;;  %v1955_v8 = vld [vmem:[#allocation10 + $0x38] sm:$0xff]  }
 0x17e   :  { %1709 = vmatpush3.bf16.msra.mxu0 %v1919_v9 }
 0x17f   :  { %1813 = vmatpush3.bf16.msra.mxu1 %v1920_v10  ;;  %1710 = vmatprep.subr.bf16.mxu0 %v1921_v11 }
 0x180   :  { %1814 = vmatprep.subr.bf16.mxu1 %v2176_v54 }
 0x182   :  { %1711 = vmatpush3.bf16.msra.mxu0 %v1922_v12 }
 0x183   :  { %1815 = vmatpush3.bf16.msra.mxu1 %v1923_v13  ;;  %1712 = vmatprep.subr.bf16.mxu0 %v1924_v15  ;;  %v1567_v13 = vld [vmem:[%s2492_s7] ss:$0 sm:$0xff]  ;;  %s2178_s7 = smov [#allocation12]  }
 0x184   :  { %1816 = vmatprep.subr.bf16.mxu1 %v2176_v54  ;;  %s1459_s16 = sshll.u32 %s2178_s7, 4  ;;  %s1460_s16 = int_to_ptr.vmem [resolvable:$true] %s1459_s16 }
 0x185   :  { %s2066_s21 = scalar_lea.vmem %s1460_s16, 256  ;;  %p2071_p13 = scmp.lt.s32.totalorder %s1460_s16, %s1460_s16 }
 0x186   :  { %1713 = vmatpush3.bf16.msra.mxu0 %v1925_v16  ;;  %p2067_p12 = scmp.ne.s32.totalorder %s1460_s16, %s2066_s21  ;;  %p2072_p0 = scmp.lt.s32.totalorder %s2066_s21, %s2066_s21 }
 0x187   :  { %1714 = vmatprep.subr.bf16.mxu0 %v1927_v18  ;;  %1817 = vmatpush3.bf16.msra.mxu1 %v1926_v17 }
 0x188   :  { %1818 = vmatprep.subr.bf16.mxu1 %v2176_v54  ;;  %p2073_p1 = por %p2072_p0, %p2071_p13 }
 0x18a   :  { %1715 = vmatpush3.bf16.msra.mxu0 %v1928_v19  ;;  %p2074_p2 = pnand %p2073_p1, %p2067_p12 }
 0x18b   :  { %1716 = vmatprep.subr.bf16.mxu0 %v1930_v20  ;;  %1819 = vmatpush3.bf16.msra.mxu1 %v1929_v21 }
 0x18c   :  { %1824 = vmatprep.subr.bf16.mxu1 %v2176_v54 }
 0x18e   :  { %1717 = vmatpush3.bf16.msra.mxu0 %v1931_v22 }
 0x18f   :  { %1733 = vmatprep.subr.bf16.mxu0 %v1934_v23 }
 0x241   :  { %v820_v24 = vpop.f32.mrb[4].mxu1 }
 0x242   :  { %v1802_v25 = vpop.f32.mrb[5].mxu1 }
 0x243   :  { %v823_v26 = vpop.f32.mrb[6].mxu1 }
 0x244   :  { %v1687_v27 = vpop.f32.mrb[8].mxu0  ;;  %v1803_v28 = vpop.f32.mrb[7].mxu1 }
 0x245   :  { %v1688_v30 = vpop.f32.mrb[9].mxu0 }
 0x246   :  { %v1689_v31 = vadd.f32 %v1688_v30, %v1687_v27  ;;  %v1690_v32 = vpop.f32.mrb[10].mxu0  ;;  %v1145_v27 = vand.u32 1, %v2322_v14 }
 0x247   :  { %v1691_v33 = vpop.f32.mrb[11].mxu0 }
 0x248   :  { %v780_v34 = vadd.f32 %v1689_v31, %v1537_v29  ;;  %v1692_v35 = vadd.f32 %v1691_v33, %v1690_v32  ;;  %vm1632_vm13 = vcmp.ne.s32.totalorder %v1145_v27, 0 }
 0x249   :  { %vm1624_vm14 = vmpackc.low %vm1632_vm13, %vm1632_vm13 }
 0x24a   :  { %v821_v36 = vadd.f32 %v820_v24, %v780_v34  ;;  %v783_v37 = vadd.f32 %v1692_v35, %v1537_v29 }
 0x24c   :  { %v827_v38 = vmax.f32 %v821_v36, 0.0  ;;  %v824_v39 = vadd.f32 %v823_v26, %v783_v37 }
 0x24e   :  { %829 = vst [vmem:[#allocation12] sm:$0xff] %v827_v38  ;;  %v828_v40 = vmax.f32 %v824_v39, 0.0 }
 0x250   :  { %830 = vst [vmem:[#allocation12 + $0x8] sm:$0xff] %v828_v40 }
 0x257   :  { %v831_v43 = vld [vmem:[#allocation12] ss:$2 sm:$0xff]  ;;  %v833_v44 = vld [vmem:[#allocation12 + $0x1] ss:$2 sm:$0xff] }
 0x258   :  { %v850_v46 = vpack.c.bf16 %v831_v43, %v831_v43  ;;  %v834_v47 = vrot.slane %v833_v44, 7  ;;  %v851_v48 = vpack.c.bf16 %v833_v44, %v833_v44 }
 0x25a   :  { %1083 = vmatprep.mubr.bf16.mxu0 %v850_v46  ;;  %v1595_v50 = vpack.c.bf16 %v834_v47, %v834_v47  ;;  %1821 = vmatmul.mubr.bf16.vlgmr.msra.gmra.mrb[8].mxu1 %v851_v48 }
 0x25b   :  { %1825 = vmatpush3.bf16.msra.mxu1 %v1932_v45  ;;  %1840 = vmatprep.mubr.msk.bf16.mxu1 %vm2177_vm6, %v2176_v54 }
 0x25c   :  { %1596 = vmatmul.mubr.msk.bf16.vlgmr.msra.gmra.mrb[12].mxu0 %vm1594_vm11, %v1595_v50  ;;  %1826 = vmatprep.subr.bf16.mxu1 %v2176_v54 }
 0x25d   :  { %1734 = vmatpush3.bf16.msra.mxu0 %v1935_v49 }
 0x25e   :  { %1735 = vmatprep.subr.bf16.mxu0 %v1937_v53 }
 0x25f   :  { %1827 = vmatpush3.bf16.msra.mxu1 %v1933_v51 }
 0x260   :  { %1828 = vmatprep.subr.bf16.mxu1 %v2176_v54 }
 0x261   :  { %1736 = vmatpush3.bf16.msra.mxu0 %v1938_v55 }
 0x262   :  { %1737 = vmatprep.subr.bf16.mxu0 %v1940_v57 }
 0x263   :  { %1829 = vmatpush3.bf16.msra.mxu1 %v1936_v52 }
 0x264   :  { %1830 = vmatprep.subr.bf16.mxu1 %v2176_v54 }
 0x265   :  { %1738 = vmatpush3.bf16.msra.mxu0 %v1941_v58 }
 0x266   :  { %1739 = vmatprep.subr.bf16.mxu0 %v1943_v60 }
 0x267   :  { %1831 = vmatpush3.bf16.msra.mxu1 %v1939_v56 }
 0x268   :  { %1832 = vmatprep.subr.bf16.mxu1 %v2176_v54 }
 0x269   :  { %1740 = vmatpush3.bf16.msra.mxu0 %v1944_v61 }
 0x26a   :  { %1741 = vmatprep.subr.bf16.mxu0 %v1946_v63 }
 0x26b   :  { %1833 = vmatpush3.bf16.msra.mxu1 %v1942_v59 }
 0x26c   :  { %1834 = vmatprep.subr.bf16.mxu1 %v2176_v54 }
 0x26d   :  { %1742 = vmatpush3.bf16.msra.mxu0 %v1947_v0 }
 0x26e   :  { %1743 = vmatprep.subr.bf16.mxu0 %v1949_v2 }
 0x26f   :  { %1835 = vmatpush3.bf16.msra.mxu1 %v1945_v62 }
 0x270   :  { %1836 = vmatprep.subr.bf16.mxu1 %v2176_v54 }
 0x271   :  { %1744 = vmatpush3.bf16.msra.mxu0 %v1950_v3 }
 0x272   :  { %1745 = vmatprep.subr.bf16.mxu0 %v1952_v5 }
 0x273   :  { %1837 = vmatpush3.bf16.msra.mxu1 %v1948_v1 }
 0x274   :  { %1838 = vmatprep.subr.bf16.mxu1 %v2176_v54 }
 0x275   :  { %1746 = vmatpush3.bf16.msra.mxu0 %v1953_v6 }
 0x276   :  { %1747 = vmatprep.subr.bf16.mxu0 %v1954_v7 }
 0x277   :  { %1839 = vmatpush3.bf16.msra.mxu1 %v1951_v4 }
 0x279   :  { %1748 = vmatpush3.bf16.msra.mxu0 %v1955_v8 }
 0x32d   :  { %v1125_v9 = vpop.f32.mrb[8].mxu1 }
 0x32e   :  { %v1822_v10 = vpop.f32.mrb[9].mxu1 }
 0x32f   :  { %v1718_v11 = vpop.f32.mrb[12].mxu0  ;;  %v1128_v12 = vpop.f32.mrb[10].mxu1 }
 0x330   :  { %v1719_v15 = vpop.f32.mrb[13].mxu0  ;;  %v1823_v54 = vpop.f32.mrb[11].mxu1 }
 0x331   :  { %v1720_v16 = vadd.f32 %v1719_v15, %v1718_v11  ;;  %v1721_v17 = vpop.f32.mrb[14].mxu0 }
 0x332   :  { %v1722_v18 = vpop.f32.mrb[15].mxu0 }
 0x333   :  { %v1086_v19 = vadd.f32 %v1720_v16, %v1567_v13 }
 0x335   :  { %v1126_v20 = vadd.f32 %v1125_v9, %v1086_v19 }
 0x337   :  { %v1131_v21 = vmax.f32 %v1126_v20, 0.0 }
 0x339   :  { %1132 = vst [vmem:[#allocation14] sm:$0xff] %v1131_v21 }
 0x340   :  { %v1133_v22 = vld [vmem:[#allocation14] ss:$2 sm:$0xf]  ;;  %v1135_v23 = vld [vmem:[#allocation14 + $0x1] ss:$2 sm:$0xf] }
 0x341   :  { %v1159_v24 = vpack.c.bf16 %v1133_v22, %v1133_v22  ;;  %v1137_v25 = vrot.slane %v1135_v23, 4  ;;  %v1160_v26 = vpack.c.bf16 %v1135_v23, %v1135_v23 }
 0x343   :  { %1392 = vmatprep.mubr.bf16.mxu0 %v1159_v24  ;;  %1841 = vmatmul.mubr.bf16.vlgmr.msra.gmra.mrb[12].mxu1 %v1160_v26  ;;  %v1138_v28 = vsel %vm1136_vm12, %v1137_v25, %v1135_v23 }
 0x344   :  { %v1139_v29 = vrot.slane %v1138_v28, 4 }
 0x346   :  { %v1140_v30 = vsel %vm1136_vm12, %v1139_v29, %v1135_v23 }
 0x347   :  { %v1155_v31 = vrot.slane %v1140_v30, 3 }
 0x349   :  { %v1625_v32 = vpack.c.bf16 %v1155_v31, %v1155_v31 }
 0x34b   :  { %1626 = vmatmul.mubr.msk.bf16.vlgmr.msra.gmra.mrb[16].mxu0 %vm1624_vm14, %v1625_v32 }
 0x34c   :  { %2077 = shalt.err (!%p2074_p2)
}
 0x34d   :  { %s2078_s23 = scalar_lea.hbm %s2495_s10, 256 }
 0x34e   :  { %p2079_p3 = scmp.ne.s32.totalorder %s2495_s10, %s2078_s23  ;;  %p2082_p4 = scmp.lt.u32.totalorder %s2078_s23, %s2495_s10 }
 0x350   :  { %p2084_p5 = pnand %p2082_p4, %p2079_p3 }
 0x352   :  { %2087 = shalt.err (!%p2084_p5)
}
 0x353   :  { %1465 = dma.vmem_to_hbm [thread:$0]  %s1460_s16, 256, %s2495_s10, [#allocation13], %s2171_s3, %s2171_s3, %s2172_s18  }
 0x354   :  { %s2088_s30 = scalar_lea.vmem %s2421_s19, 512  ;;  %p2093_p7 = scmp.lt.s32.totalorder %s2421_s19, %s2421_s19 }
 0x355   :  { %p2089_p6 = scmp.ne.s32.totalorder %s2421_s19, %s2088_s30  ;;  %p2094_p8 = scmp.lt.s32.totalorder %s2088_s30, %s2088_s30 }
 0x357   :  { %p2095_p9 = por %p2094_p8, %p2093_p7 }
 0x359   :  { %p2096_p10 = pnand %p2095_p9, %p2089_p6 }
 0x35b   :  { %2099 = shalt.err (!%p2096_p10)
}
 0x35c   :  { %s2100_s28 = scalar_lea.hbm %s2494_s9, 512 }
 0x35d   :  { %p2101_p11 = scmp.ne.s32.totalorder %s2494_s9, %s2100_s28  ;;  %p2104_p12 = scmp.lt.u32.totalorder %s2100_s28, %s2494_s9 }
 0x35f   :  { %p2106_p13 = pnand %p2104_p12, %p2101_p11 }
 0x361   :  { %2109 = shalt.err (!%p2106_p13)
}
 0x362   :  { %1453 = dma.vmem_to_hbm [thread:$0]  %s2421_s19, 512, %s2494_s9, [#allocation4], %s2171_s3, %s2171_s3, %s2172_s18  }
 0x363   :  { %s2180_s22 = smov [#allocation14]  }
 0x364   :  { %s1472_s7 = sshll.u32 %s2180_s22, 4  ;;  %s1473_s7 = int_to_ptr.vmem [resolvable:$true] %s1472_s7 }
 0x365   :  { %s2110_s16 = scalar_lea.vmem %s1473_s7, 128  ;;  %p2115_p1 = scmp.lt.s32.totalorder %s1473_s7, %s1473_s7 }
 0x366   :  { %p2111_p0 = scmp.ne.s32.totalorder %s1473_s7, %s2110_s16  ;;  %p2116_p2 = scmp.lt.s32.totalorder %s2110_s16, %s2110_s16 }
 0x368   :  { %p2117_p3 = por %p2116_p2, %p2115_p1 }
 0x36a   :  { %p2118_p4 = pnand %p2117_p3, %p2111_p0 }
 0x36c   :  { %2121 = shalt.err (!%p2118_p4)
}
 0x36d   :  { %s2122_s0 = scalar_lea.hbm %s2496_s11, 128 }
 0x36e   :  { %p2123_p5 = scmp.ne.s32.totalorder %s2496_s11, %s2122_s0  ;;  %p2126_p6 = scmp.lt.u32.totalorder %s2122_s0, %s2496_s11 }
 0x370   :  { %p2128_p7 = pnand %p2126_p6, %p2123_p5 }
 0x372   :  { %2131 = shalt.err (!%p2128_p7)
}
 0x373   :  { %1475 = dma.vmem_to_hbm [thread:$0]  %s1473_s7, 128, %s2496_s11, [#allocation13]   ;;  %v1597_v37 = vld [vmem:[%s2493_s8] ss:$0 sm:$0xff] }
 0x374   :  { %s2181_s26 = smov [#allocation15]  }
 0x375   :  { %s1482_s27 = sshll.u32 %s2181_s26, 4  ;;  %s1483_s27 = int_to_ptr.vmem [resolvable:$true] %s1482_s27 }
 0x376   :  { %s2132_s11 = scalar_lea.vmem %s1483_s27, 64  ;;  %p2137_p9 = scmp.lt.s32.totalorder %s1483_s27, %s1483_s27 }
 0x377   :  { %p2133_p8 = scmp.ne.s32.totalorder %s1483_s27, %s2132_s11  ;;  %p2138_p10 = scmp.lt.s32.totalorder %s2132_s11, %s2132_s11 }
 0x379   :  { %p2139_p11 = por %p2138_p10, %p2137_p9 }
 0x37b   :  { %p2140_p12 = pnand %p2139_p11, %p2133_p8 }
 0x416   :  { %v1434_v14 = vpop.f32.mrb[12].mxu1 }
 0x417   :  { %v1842_v33 = vpop.f32.mrb[13].mxu1 }
 0x418   :  { %v1437_v34 = vpop.f32.mrb[14].mxu1 }
 0x419   :  { %v1843_v35 = vpop.f32.mrb[15].mxu1 }
 0x41e   :  { %v1749_v36 = vpop.f32.mrb[16].mxu0 }
 0x41f   :  { %v1750_v38 = vpop.f32.mrb[17].mxu0 }
 0x420   :  { %v1751_v39 = vadd.f32 %v1750_v38, %v1749_v36  ;;  %v1752_v40 = vpop.f32.mrb[18].mxu0 }
 0x421   :  { %v1753_v41 = vpop.f32.mrb[19].mxu0 }
 0x422   :  { %v1395_v42 = vadd.f32 %v1751_v39, %v1597_v37 }
 0x424   :  { %v1435_v43 = vadd.f32 %v1434_v14, %v1395_v42 }
 0x426   :  { %v1440_v44 = vmax.f32 %v1435_v43, 0.0 }
 0x428   :  { %1441 = vst [vmem:[#allocation15] sm:$0xf] %v1440_v44 }
 0x429   :  { %2143 = shalt.err (!%p2140_p12)
}
 0x42a   :  { %s2144_s29 = scalar_lea.hbm %s2497_s12, 64 }
 0x42b   :  { %p2145_p13 = scmp.ne.s32.totalorder %s2497_s12, %s2144_s29  ;;  %p2148_p0 = scmp.lt.u32.totalorder %s2144_s29, %s2497_s12 }
 0x42d   :  { %p2150_p1 = pnand %p2148_p0, %p2145_p13 }
 0x42f   :  { %2153 = shalt.err (!%p2150_p1)
}
 0x430   :  { %1485 = dma.vmem_to_hbm [thread:$0]  %s1483_s27, 64, %s2497_s12, [#allocation16]  }
 0x431   :  { %2160 = dma.done.wait [#allocation4], 512  }
 0x432   :  { %2161 = vsyncadd [#allocation4], 4294966784 }
 0x433   :  { %2162 = dma.done.wait [#allocation13], 384  }
 0x434   :  { %2163 = vsyncadd [#allocation13], 4294966912 }
 0x435   :  { %2164 = dma.done.wait [#allocation16], 64  }
 0x436   :  { %2165 = vsyncadd [#allocation16], 4294967232 }
 0x437   :  { %1498 = vsyncpa [#allocation3], 1 }
 0x438   :  { %1499 = vsyncpa [#allocation6], 1 }
 0x439   :  { %1500 = vsyncpa [#allocation9], 1 }
 0x43a   :  { %1501 = vsyncpa [#allocation4], 1 }
 0x43b   :  { %1502 = vsyncpa [#allocation13], 1 }
 0x43c   :  { %1503 = vsyncpa [#allocation16], 1 }

</bundles_post_ra>
